<compile_context>
chip_gen: v6e
topology: v6e:2x2x1
jax: 0.10.0
libtpu: 0.0.40
codegen_flags: <defaults>
</compile_context>

<pallas_src>
import functools

import jax
import jax.numpy as jnp
from jax.experimental import pallas as pl
from jax.experimental.pallas import tpu as pltpu

NB_FEATURES = 27
HIDDEN = 200
N_OUT = 7

# Padded, lane/MXU-aligned dims used inside the kernel.
F_PAD = 32      # 27  -> 32   (block last dim == full array dim)
H_PAD = 256     # 200 -> 256
OUT_PAD = 128   # 7   -> 128  (lane-dense output => unmasked vst)

MAX_TILE_B = 1024
_TILE_BUCKETS = (1024, 512, 256, 128)


def _round_up(x, m):
    return (x + m - 1) // m * m


def _choose_tile_b(B):
    """Fixed tile buckets (avoid recompiles); prefer >=2 grid steps so the
    ('parallel',) batch axis can span both v7x TensorCores."""
    if B <= 128:
        return 128
    for t in _TILE_BUCKETS:
        if t <= MAX_TILE_B and pl.cdiv(B, t) >= 2:
            return t
    return 128


def _mlp_kernel(x_ref,
                w1_ref, b1_ref,
                w2_ref, b2_ref,
                w3_ref, b3_ref,
                w4_ref, b4_ref,
                o_ref):
    # bf16 matmul operands, f32 accumulation (MXU-native); bias/ReLU in f32.
    h = jnp.dot(x_ref[...], w1_ref[...], preferred_element_type=jnp.float32)
    h = jnp.maximum(h + b1_ref[...], 0.0).astype(jnp.bfloat16)

    h = jnp.dot(h, w2_ref[...], preferred_element_type=jnp.float32)
    h = jnp.maximum(h + b2_ref[...], 0.0).astype(jnp.bfloat16)

    h = jnp.dot(h, w3_ref[...], preferred_element_type=jnp.float32)
    h = jnp.maximum(h + b3_ref[...], 0.0).astype(jnp.bfloat16)

    h = jnp.dot(h, w4_ref[...], preferred_element_type=jnp.float32)
    o_ref[...] = (h + b4_ref[...]).astype(o_ref.dtype)


def pad_params(params):
    """One-time pad/cast of raw f32 params to kernel layout (bf16 weights, f32 biases)."""
    def padw(w, rows, cols):
        w = jnp.asarray(w, jnp.bfloat16)
        return jnp.zeros((rows, cols), jnp.bfloat16).at[:w.shape[0], :w.shape[1]].set(w)

    def padb(b, cols):
        b = jnp.asarray(b, jnp.float32).reshape(1, -1)
        return jnp.zeros((1, cols), jnp.float32).at[:, :b.shape[1]].set(b)

    return {
        "w1": padw(params["w1"], F_PAD, H_PAD),   "b1": padb(params["b1"], H_PAD),
        "w2": padw(params["w2"], H_PAD, H_PAD),   "b2": padb(params["b2"], H_PAD),
        "w3": padw(params["w3"], H_PAD, H_PAD),   "b3": padb(params["b3"], H_PAD),
        "w4": padw(params["w4"], H_PAD, OUT_PAD), "b4": padb(params["b4"], OUT_PAD),
    }


@functools.partial(jax.jit, static_argnames=("tile_b",))
def _forward(x, pp, tile_b):
    """x: (B, 27) f32; pp: padded params. Returns (B, 7) f32."""
    B = x.shape[0]
    B_pad = _round_up(B, tile_b)
    n_tiles = B_pad // tile_b

    # Activation pad + bf16 cast inside the jit (fused, no eager HBM round-trips).
    x_pad = jnp.zeros((B_pad, F_PAD), jnp.bfloat16)
    x_pad = x_pad.at[:B, :NB_FEATURES].set(x.astype(jnp.bfloat16))

    # Weights/biases: constant block index => loaded once, resident in VMEM.
    def wspec(r, c):
        return pl.BlockSpec((r, c), lambda i: (0, 0))

    in_specs = [
        pl.BlockSpec((tile_b, F_PAD), lambda i: (i, 0)),   # streamed activations
        wspec(F_PAD, H_PAD),   wspec(1, H_PAD),
        wspec(H_PAD, H_PAD),   wspec(1, H_PAD),
        wspec(H_PAD, H_PAD),   wspec(1, H_PAD),
        wspec(H_PAD, OUT_PAD), wspec(1, OUT_PAD),
    ]
    out_specs = pl.BlockSpec((tile_b, OUT_PAD), lambda i: (i, 0))

    flops = 2 * B_pad * (F_PAD * H_PAD + 2 * H_PAD * H_PAD + H_PAD * OUT_PAD)
    bytes_accessed = (
        B_pad * F_PAD * 2                 # bf16 activations in
        + B_pad * OUT_PAD * 4             # f32 output
        + sum(int(v.size) * v.dtype.itemsize
              for v in jax.tree_util.tree_leaves(pp))
    )

    out = pl.pallas_call(
        _mlp_kernel,
        out_shape=jax.ShapeDtypeStruct((B_pad, OUT_PAD), jnp.float32),
        grid=(n_tiles,),
        in_specs=in_specs,
        out_specs=out_specs,
        compiler_params=pltpu.CompilerParams(
            dimension_semantics=("parallel",),   # megacore sharding over batch tiles
        ),
        cost_estimate=pl.CostEstimate(
            flops=flops, transcendentals=0, bytes_accessed=bytes_accessed),
    )(x_pad,
      pp["w1"], pp["b1"],
      pp["w2"], pp["b2"],
      pp["w3"], pp["b3"],
      pp["w4"], pp["b4"])

    return out[:B, :N_OUT]


class PallasNet:
    """Pallas-TPU forward for the PyTorch `Net`. Pads/casts weights exactly once."""

    def __init__(self, params):
        self._pp = pad_params(params)

    def __call__(self, x):
        tile_b = _choose_tile_b(x.shape[0])
        return _forward(x, self._pp, tile_b)


def init_params(key):
    """Deterministic init mimicking PyTorch nn.Linear default U(-1/sqrt(fan_in), +)."""
    dims = [(NB_FEATURES, HIDDEN), (HIDDEN, HIDDEN), (HIDDEN, HIDDEN), (HIDDEN, N_OUT)]
    params = {}
    for i, (fan_in, fan_out) in enumerate(dims, start=1):
        key, kw, kb = jax.random.split(key, 3)
        bound = 1.0 / jnp.sqrt(jnp.float32(fan_in))
        params[f"w{i}"] = jax.random.uniform(
            kw, (fan_in, fan_out), jnp.float32, -bound, bound)
        params[f"b{i}"] = jax.random.uniform(
            kb, (1, fan_out), jnp.float32, -bound, bound)
    return params


def _reference_f32(x, p):
    h = jnp.maximum(x @ p["w1"] + p["b1"], 0.0)
    h = jnp.maximum(h @ p["w2"] + p["b2"], 0.0)
    h = jnp.maximum(h @ p["w3"] + p["b3"], 0.0)
    return h @ p["w4"] + p["b4"]


def _reference_bf16(x, pp):
    """Pure-JAX reference doing the same bf16-operand / f32-accumulate math."""
    h = jnp.zeros((x.shape[0], F_PAD), jnp.bfloat16)
    h = h.at[:, :NB_FEATURES].set(x.astype(jnp.bfloat16))
    for wk, bk in (("w1", "b1"), ("w2", "b2"), ("w3", "b3")):
        h = jnp.dot(h, pp[wk], preferred_element_type=jnp.float32) + pp[bk]
        h = jnp.maximum(h, 0.0).astype(jnp.bfloat16)
    out = jnp.dot(h, pp["w4"], preferred_element_type=jnp.float32) + pp["b4"]
    return out[:, :N_OUT]


if __name__ == "__main__":
    key = jax.random.PRNGKey(0)
    key, kx = jax.random.split(key)
    batch = 8
    x = jax.random.normal(kx, (batch, NB_FEATURES), jnp.float32)

    params = init_params(key)
    model = PallasNet(params)                     # weights padded/cast once here

    out = jax.block_until_ready(model(x))
    assert out.shape == (batch, N_OUT)

    # Exact-math check vs. a pure-JAX bf16/f32-accumulate reference.
    ref_bf16 = _reference_bf16(x, model._pp)
    assert jnp.allclose(out, ref_bf16, atol=1e-4, rtol=1e-3), "mismatch vs bf16 reference"

    # Coarse semantic check vs. the full-f32 PyTorch-equivalent reference.
    # TODO(synk): keep layer-1 LHS in f32 if the caller needs tighter-than-bf16 agreement.
    ref_f32 = _reference_f32(x, params)
    assert jnp.allclose(out, ref_f32, atol=5e-2, rtol=5e-2), "mismatch vs f32 reference"

    print("KERNEL_OK")
</pallas_src>

<mosaic_0001>
module attributes {stable_mosaic.version = 11 : i64} {
  func.func @_mlp_kernel(%arg0: i32, %arg1: memref<128x32xbf16, #tpu.memory_space<vmem>>, %arg2: memref<32x256xbf16, #tpu.memory_space<vmem>>, %arg3: memref<1x256xf32, #tpu.memory_space<vmem>>, %arg4: memref<256x256xbf16, #tpu.memory_space<vmem>>, %arg5: memref<1x256xf32, #tpu.memory_space<vmem>>, %arg6: memref<256x256xbf16, #tpu.memory_space<vmem>>, %arg7: memref<1x256xf32, #tpu.memory_space<vmem>>, %arg8: memref<256x128xbf16, #tpu.memory_space<vmem>>, %arg9: memref<1x128xf32, #tpu.memory_space<vmem>>, %arg10: memref<128x128xf32, #tpu.memory_space<vmem>>) attributes {dimension_semantics = [#tpu.dimension_semantics<parallel>], iteration_bounds = array<i64: 1>, scalar_prefetch = 0 : i64, scratch_operands = 0 : i64, tpu.core_type = #tpu.core_type<tc>, window_params = [{transform_indices = @transform_0, window_bounds = array<i64: 128, 32>}, {pipeline_mode = #tpu.pipeline_mode<synchronous>, transform_indices = @transform_1, window_bounds = array<i64: 32, 256>}, {pipeline_mode = #tpu.pipeline_mode<synchronous>, transform_indices = @transform_2, window_bounds = array<i64: 1, 256>}, {pipeline_mode = #tpu.pipeline_mode<synchronous>, transform_indices = @transform_3, window_bounds = array<i64: 256, 256>}, {pipeline_mode = #tpu.pipeline_mode<synchronous>, transform_indices = @transform_4, window_bounds = array<i64: 1, 256>}, {pipeline_mode = #tpu.pipeline_mode<synchronous>, transform_indices = @transform_5, window_bounds = array<i64: 256, 256>}, {pipeline_mode = #tpu.pipeline_mode<synchronous>, transform_indices = @transform_6, window_bounds = array<i64: 1, 256>}, {pipeline_mode = #tpu.pipeline_mode<synchronous>, transform_indices = @transform_7, window_bounds = array<i64: 256, 128>}, {pipeline_mode = #tpu.pipeline_mode<synchronous>, transform_indices = @transform_8, window_bounds = array<i64: 1, 128>}, {transform_indices = @transform_9, window_bounds = array<i64: 128, 128>}]} {
    %c0 = arith.constant 0 : index
    %c0_0 = arith.constant 0 : index
    %0 = vector.load %arg1[%c0, %c0_0] : memref<128x32xbf16, #tpu.memory_space<vmem>>, vector<128x32xbf16>
    %c0_1 = arith.constant 0 : index
    %c0_2 = arith.constant 0 : index
    %1 = vector.load %arg2[%c0_1, %c0_2] : memref<32x256xbf16, #tpu.memory_space<vmem>>, vector<32x256xbf16>
    %cst = arith.constant dense<0.000000e+00> : vector<128x256xf32>
    %2 = tpu.matmul %0, %1, %cst {dimension_numbers = #tpu.dot_dimension_numbers<[1], [0], [0], [1], [0, 0, 1, 1], [], []>} : vector<128x32xbf16>, vector<32x256xbf16>, vector<128x256xf32> -> vector<128x256xf32>
    %c0_3 = arith.constant 0 : index
    %c0_4 = arith.constant 0 : index
    %3 = vector.load %arg3[%c0_3, %c0_4] : memref<1x256xf32, #tpu.memory_space<vmem>>, vector<1x256xf32>
    %4 = vector.broadcast %3 : vector<1x256xf32> to vector<128x256xf32>
    %5 = arith.addf %2, %4 : vector<128x256xf32>
    %cst_5 = arith.constant 0.000000e+00 : f32
    %6 = vector.broadcast %cst_5 : f32 to vector<128x256xf32>
    %7 = arith.maximumf %5, %6 : vector<128x256xf32>
    %8 = arith.truncf %7 : vector<128x256xf32> to vector<128x256xbf16>
    %c0_6 = arith.constant 0 : index
    %c0_7 = arith.constant 0 : index
    %9 = vector.load %arg4[%c0_6, %c0_7] : memref<256x256xbf16, #tpu.memory_space<vmem>>, vector<256x256xbf16>
    %cst_8 = arith.constant dense<0.000000e+00> : vector<128x256xf32>
    %10 = tpu.matmul %8, %9, %cst_8 {dimension_numbers = #tpu.dot_dimension_numbers<[1], [0], [0], [1], [0, 0, 1, 1], [], []>} : vector<128x256xbf16>, vector<256x256xbf16>, vector<128x256xf32> -> vector<128x256xf32>
    %c0_9 = arith.constant 0 : index
    %c0_10 = arith.constant 0 : index
    %11 = vector.load %arg5[%c0_9, %c0_10] : memref<1x256xf32, #tpu.memory_space<vmem>>, vector<1x256xf32>
    %12 = vector.broadcast %11 : vector<1x256xf32> to vector<128x256xf32>
    %13 = arith.addf %10, %12 : vector<128x256xf32>
    %cst_11 = arith.constant 0.000000e+00 : f32
    %14 = vector.broadcast %cst_11 : f32 to vector<128x256xf32>
    %15 = arith.maximumf %13, %14 : vector<128x256xf32>
    %16 = arith.truncf %15 : vector<128x256xf32> to vector<128x256xbf16>
    %c0_12 = arith.constant 0 : index
    %c0_13 = arith.constant 0 : index
    %17 = vector.load %arg6[%c0_12, %c0_13] : memref<256x256xbf16, #tpu.memory_space<vmem>>, vector<256x256xbf16>
    %cst_14 = arith.constant dense<0.000000e+00> : vector<128x256xf32>
    %18 = tpu.matmul %16, %17, %cst_14 {dimension_numbers = #tpu.dot_dimension_numbers<[1], [0], [0], [1], [0, 0, 1, 1], [], []>} : vector<128x256xbf16>, vector<256x256xbf16>, vector<128x256xf32> -> vector<128x256xf32>
    %c0_15 = arith.constant 0 : index
    %c0_16 = arith.constant 0 : index
    %19 = vector.load %arg7[%c0_15, %c0_16] : memref<1x256xf32, #tpu.memory_space<vmem>>, vector<1x256xf32>
    %20 = vector.broadcast %19 : vector<1x256xf32> to vector<128x256xf32>
    %21 = arith.addf %18, %20 : vector<128x256xf32>
    %cst_17 = arith.constant 0.000000e+00 : f32
    %22 = vector.broadcast %cst_17 : f32 to vector<128x256xf32>
    %23 = arith.maximumf %21, %22 : vector<128x256xf32>
    %24 = arith.truncf %23 : vector<128x256xf32> to vector<128x256xbf16>
    %c0_18 = arith.constant 0 : index
    %c0_19 = arith.constant 0 : index
    %25 = vector.load %arg8[%c0_18, %c0_19] : memref<256x128xbf16, #tpu.memory_space<vmem>>, vector<256x128xbf16>
    %cst_20 = arith.constant dense<0.000000e+00> : vector<128x128xf32>
    %26 = tpu.matmul %24, %25, %cst_20 {dimension_numbers = #tpu.dot_dimension_numbers<[1], [0], [0], [1], [0, 0, 1, 1], [], []>} : vector<128x256xbf16>, vector<256x128xbf16>, vector<128x128xf32> -> vector<128x128xf32>
    %c0_21 = arith.constant 0 : index
    %c0_22 = arith.constant 0 : index
    %27 = vector.load %arg9[%c0_21, %c0_22] : memref<1x128xf32, #tpu.memory_space<vmem>>, vector<1x128xf32>
    %28 = vector.broadcast %27 : vector<1x128xf32> to vector<128x128xf32>
    %29 = arith.addf %26, %28 : vector<128x128xf32>
    %c0_23 = arith.constant 0 : index
    %c0_24 = arith.constant 0 : index
    %30 = vector.load %arg10[%c0_23, %c0_24] : memref<128x128xf32, #tpu.memory_space<vmem>>, vector<128x128xf32>
    tpu.vector_store %arg10[%c0_23, %c0_24], %29 {strides = array<i32>} : memref<128x128xf32, #tpu.memory_space<vmem>>, vector<128x128xf32>,
    return
  }
  func.func @transform_0(%arg0: i32) -> (i32, i32) {
    %c0_i32 = arith.constant 0 : i32
    %c0_i32_0 = arith.constant 0 : i32
    return %arg0, %c0_i32 : i32, i32
  }
  func.func @transform_1(%arg0: i32) -> (i32, i32) {
    %c0_i32 = arith.constant 0 : i32
    %c0_i32_0 = arith.constant 0 : i32
    %c0_i32_1 = arith.constant 0 : i32
    return %c0_i32, %c0_i32_0 : i32, i32
  }
  func.func @transform_2(%arg0: i32) -> (i32, i32) {
    %c0_i32 = arith.constant 0 : i32
    %c0_i32_0 = arith.constant 0 : i32
    %c0_i32_1 = arith.constant 0 : i32
    return %c0_i32, %c0_i32_0 : i32, i32
  }
  func.func @transform_3(%arg0: i32) -> (i32, i32) {
    %c0_i32 = arith.constant 0 : i32
    %c0_i32_0 = arith.constant 0 : i32
    %c0_i32_1 = arith.constant 0 : i32
    return %c0_i32, %c0_i32_0 : i32, i32
  }
  func.func @transform_4(%arg0: i32) -> (i32, i32) {
    %c0_i32 = arith.constant 0 : i32
    %c0_i32_0 = arith.constant 0 : i32
    %c0_i32_1 = arith.constant 0 : i32
    return %c0_i32, %c0_i32_0 : i32, i32
  }
  func.func @transform_5(%arg0: i32) -> (i32, i32) {
    %c0_i32 = arith.constant 0 : i32
    %c0_i32_0 = arith.constant 0 : i32
    %c0_i32_1 = arith.constant 0 : i32
    return %c0_i32, %c0_i32_0 : i32, i32
  }
  func.func @transform_6(%arg0: i32) -> (i32, i32) {
    %c0_i32 = arith.constant 0 : i32
    %c0_i32_0 = arith.constant 0 : i32
    %c0_i32_1 = arith.constant 0 : i32
    return %c0_i32, %c0_i32_0 : i32, i32
  }
  func.func @transform_7(%arg0: i32) -> (i32, i32) {
    %c0_i32 = arith.constant 0 : i32
    %c0_i32_0 = arith.constant 0 : i32
    %c0_i32_1 = arith.constant 0 : i32
    return %c0_i32, %c0_i32_0 : i32, i32
  }
  func.func @transform_8(%arg0: i32) -> (i32, i32) {
    %c0_i32 = arith.constant 0 : i32
    %c0_i32_0 = arith.constant 0 : i32
    %c0_i32_1 = arith.constant 0 : i32
    return %c0_i32, %c0_i32_0 : i32, i32
  }
  func.func @transform_9(%arg0: i32) -> (i32, i32) {
    %c0_i32 = arith.constant 0 : i32
    %c0_i32_0 = arith.constant 0 : i32
    return %arg0, %c0_i32 : i32, i32
  }
}

</mosaic_0001>

<bundles_post_ra>
// kernel: _forward.1
= control target key start
LH: loop header
LB: loop body
LE: loop exit
PB: predicated region body
PF: predicated region fallthrough
CT: control target
= control target key end

     0   :  { %14 = vsyncpa [#allocation3], 0  ;;  %s2038_s0 = inlined_call_operand.vmem [shape: bf16[128,32], index: 0, kind: input, shape index: {}]   ;;  %s2039_s1 = inlined_call_operand.vmem [shape: bf16[32,256], index: 1, kind: input, shape index: {}]   ;;  %s2040_s2 = inlined_call_operand.vmem [shape: f32[1,256], index: 2, kind: input, shape index: {}]   ;;  %s2041_s3 = inlined_call_operand.hbm [shape: bf16[256,256], index: 3, kind: input, shape index: {}]   ;;  %s2042_s4 = inlined_call_operand.vmem [shape: f32[1,256], index: 4, kind: input, shape index: {}]   ;;  %s2043_s5 = inlined_call_operand.hbm [shape: bf16[256,256], index: 5, kind: input, shape index: {}]   ;;  %s2044_s6 = inlined_call_operand.vmem [shape: f32[1,256], index: 6, kind: input, shape index: {}]   ;;  %s2045_s7 = inlined_call_operand.hbm [shape: bf16[256,128], index: 7, kind: input, shape index: {}]   ;;  %s2046_s8 = inlined_call_operand.vmem [shape: f32[1,128], index: 8, kind: input, shape index: {}]   ;;  %s2047_s9 = inlined_call_operand.vmem [shape: f32[128,128], index: 9, kind: output, shape index: {}]  }
   0x1   :  { %15 = vsyncpa [#allocation5], 0  ;;  %s1715_s30 = smov [#allocation4]   ;;  %s1716_s11 = smov [#allocation2]  }
   0x2   :  { %s41_s10 = sshll.u32 %s1715_s30, 4  ;;  %s27_s12 = sshll.u32 %s1716_s11, 4  ;;  %s42_s10 = int_to_ptr.vmem [resolvable:$true] %s41_s10  ;;  %s28_s12 = int_to_ptr.vmem [resolvable:$true] %s27_s12 }
   0x3   :  { %s1659_s13 = scalar_lea.vmem %s42_s10, 4096  ;;  %p1664_p1 = scmp.lt.s32.totalorder %s42_s10, %s42_s10 }
   0x4   :  { %p1660_p0 = scmp.ne.s32.totalorder %s42_s10, %s1659_s13  ;;  %p1665_p2 = scmp.lt.s32.totalorder %s1659_s13, %s1659_s13 }
   0x6   :  { %p1666_p3 = por %p1665_p2, %p1664_p1 }
   0x8   :  { %p1667_p4 = pnand %p1666_p3, %p1660_p0 }
   0xa   :  { %1670 = shalt.err (!%p1667_p4)
}
   0xb   :  { %s1717_s14 = smov 128   ;;  %s1718_s15 = smov 8  }
   0xc   :  { %47 = dma.hbm_to_vmem [thread:$0]  %s2043_s5, 4096, %s42_s10, [#allocation5], %s1717_s14, %s1717_s14, %s1718_s15  }
   0xd   :  { %s1679_s18 = scalar_lea.vmem %s28_s12, 4096  ;;  %p1684_p6 = scmp.lt.s32.totalorder %s28_s12, %s28_s12 }
   0xe   :  { %p1680_p5 = scmp.ne.s32.totalorder %s28_s12, %s1679_s18  ;;  %p1685_p7 = scmp.lt.s32.totalorder %s1679_s18, %s1679_s18 }
  0x10   :  { %p1686_p8 = por %p1685_p7, %p1684_p6 }
  0x12   :  { %p1687_p9 = pnand %p1686_p8, %p1680_p5 }
  0x14   :  { %1690 = shalt.err (!%p1687_p9)
}
  0x15   :  { %33 = dma.hbm_to_vmem [thread:$0]  %s2041_s3, 4096, %s28_s12, [#allocation3], %s1717_s14, %s1717_s14, %s1718_s15  }
  0x16   :  { %s1719_s21 = smov [#allocation6]  }
  0x17   :  { %s55_s22 = sshll.u32 %s1719_s21, 4  ;;  %s56_s22 = int_to_ptr.vmem [resolvable:$true] %s55_s22 }
  0x18   :  { %s1699_s23 = scalar_lea.vmem %s56_s22, 2048  ;;  %p1704_p11 = scmp.lt.s32.totalorder %s56_s22, %s56_s22 }
  0x19   :  { %p1700_p10 = scmp.ne.s32.totalorder %s56_s22, %s1699_s23  ;;  %p1705_p12 = scmp.lt.s32.totalorder %s1699_s23, %s1699_s23 }
  0x1b   :  { %p1706_p13 = por %p1705_p12, %p1704_p11 }
  0x1d   :  { %p1707_p0 = pnand %p1706_p13, %p1700_p10 }
  0x1f   :  { %1710 = shalt.err (!%p1707_p0)
}
  0x20   :  { %s1720_s5 = smov 64   ;;  %s1721_s24 = smov 4  }
  0x21   :  { %61 = dma.hbm_to_vmem [thread:$0]  %s2045_s7, 2048, %s56_s22, [#allocation5], %s1720_s5, %s1720_s5, %s1721_s24  }
  0x22   :  { %1711 = dma.done.wait [#allocation3], 4096  }
  0x23   :  { %1712 = vsyncadd [#allocation3], 4294963200 }
  0x24   :  { %1713 = dma.done.wait [#allocation5], 6144  }
  0x25   :  { %1714 = vsyncadd [#allocation5], 4294961152  ;;  %v1722_v0 = vmov 0   ;;  %v1525_v1 = vld [vmem:[%s2039_s1 + $0x14] ss:$8 sps:$4 sm:$0xff]   ;;  %v1531_v5 = vld [vmem:[%s2038_s0] sm:$0xff]  }
  0x26   :  { %223 = vmatprep.mubr.bf16.mxu0 %v1722_v0  ;;  %v1527_v2 = vld [vmem:[%s2039_s1 + $0x10] ss:$8 sps:$4 sm:$0xff]   ;;  %203 = vmatprep.subr.bf16.mxu0 %v1525_v1  ;;  %v1528_v3 = vld [vmem:[%s2039_s1 + $0x4] ss:$8 sps:$4 sm:$0xff]   ;;  %v1530_v4 = vld [vmem:[%s2039_s1] ss:$8 sps:$4 sm:$0xff]  }
  0x27   :  { %204 = vmatpush1.bf16.msra.mxu0 %v1527_v2  ;;  %vm166_vm0 = vcmask 261120   ;;  %v1539_v6 = vld [vmem:[#allocation2 + $0x74] ss:$8 sps:$4 sm:$0xff]   ;;  %v1541_v7 = vld [vmem:[#allocation2 + $0x70] ss:$8 sps:$4 sm:$0xff]   ;;  %v1532_v9 = vld [vmem:[%s2038_s0 + $0x8] sm:$0xff]  }
  0x28   :  { %205 = vmatprep.subr.bf16.mxu0 %v1528_v3  ;;  %v1542_v8 = vld [vmem:[#allocation2 + $0x64] ss:$8 sps:$4 sm:$0xff]   ;;  %556 = vmatprep.subr.bf16.mxu1 %v1539_v6  ;;  %v1544_v10 = vld [vmem:[#allocation2 + $0x60] ss:$8 sps:$4 sm:$0xff]   ;;  %v1545_v11 = vld [vmem:[#allocation2 + $0x54] ss:$8 sps:$4 sm:$0xff]  }
  0x29   :  { %557 = vmatpush1.bf16.msra.mxu1 %v1541_v7  ;;  %v1547_v12 = vld [vmem:[#allocation2 + $0x50] ss:$8 sps:$4 sm:$0xff]   ;;  %v1548_v13 = vld [vmem:[#allocation2 + $0x44] ss:$8 sps:$4 sm:$0xff]   ;;  %v1550_v15 = vld [vmem:[#allocation2 + $0x40] ss:$8 sps:$4 sm:$0xff]   ;;  %v96_v7 = vlaneseq }
  0x2a   :  { %558 = vmatprep.subr.bf16.mxu1 %v1542_v8  ;;  %v1533_v14 = vld [vmem:[%s2038_s0 + $0x10] sm:$0xff]   ;;  %v1554_v18 = vld [vmem:[#allocation2 + $0x24] ss:$8 sps:$4 sm:$0xff]   ;;  %v1534_v19 = vld [vmem:[%s2038_s0 + $0x18] sm:$0xff]  }
  0x2b   :  { %206 = vmatpush1.bf16.msra.mxu0 %v1530_v4  ;;  %v1551_v16 = vld [vmem:[#allocation2 + $0x34] ss:$8 sps:$4 sm:$0xff]   ;;  %v1553_v17 = vld [vmem:[#allocation2 + $0x30] ss:$8 sps:$4 sm:$0xff]   ;;  %v1556_v20 = vld [vmem:[#allocation2 + $0x20] ss:$8 sps:$4 sm:$0xff]  }
  0x2c   :  { %v1557_v21 = vld [vmem:[#allocation2 + $0x14] ss:$8 sps:$4 sm:$0xff]   ;;  %v1559_v22 = vld [vmem:[#allocation2 + $0x10] ss:$8 sps:$4 sm:$0xff]   ;;  %v1560_v23 = vld [vmem:[#allocation2 + $0x4] ss:$8 sps:$4 sm:$0xff]  }
  0x2d   :  { %559 = vmatpush1.bf16.msra.mxu1 %v1544_v10  ;;  %v1535_v24 = vld [vmem:[%s2038_s0 + $0x20] sm:$0xff]   ;;  %v1563_v26 = vld [vmem:[#allocation2 + $0xf4] ss:$8 sps:$4 sm:$0xff]   ;;  %v1565_v27 = vld [vmem:[#allocation2 + $0xf0] ss:$8 sps:$4 sm:$0xff]   ;;  %v97_v8 = vshrl.u32 %v96_v7, 7 }
  0x2e   :  { %1348 = vmatmul.mubr.msk.bf16.vlgmr.msra.gmra.mxu0 %vm166_vm0, %v1531_v5  ;;  %560 = vmatprep.subr.bf16.mxu1 %v1545_v11  ;;  %v1562_v25 = vld [vmem:[#allocation2] ss:$8 sps:$4 sm:$0xff]   ;;  %v1566_v28 = vld [vmem:[#allocation2 + $0xe4] ss:$8 sps:$4 sm:$0xff]   ;;  %v1569_v31 = vld [vmem:[#allocation2 + $0xd4] ss:$8 sps:$4 sm:$0xff]  }
  0x2f   :  { %233 = vmatprep.mubr.bf16.mxu0 %v1722_v0  ;;  %v1536_v29 = vld [vmem:[%s2038_s0 + $0x28] sm:$0xff]   ;;  %v1571_v32 = vld [vmem:[#allocation2 + $0xd0] ss:$8 sps:$4 sm:$0xff]   ;;  %v1575_v36 = vld [vmem:[#allocation2 + $0xb4] ss:$8 sps:$4 sm:$0xff]   ;;  %v1836_v10 = vsub.s32 0, %v97_v8 }
  0x30   :  { %v1568_v30 = vld [vmem:[#allocation2 + $0xe0] ss:$8 sps:$4 sm:$0xff]   ;;  %v1572_v33 = vld [vmem:[#allocation2 + $0xc4] ss:$8 sps:$4 sm:$0xff]   ;;  %v1537_v34 = vld [vmem:[%s2038_s0 + $0x30] sm:$0xff]  }
  0x31   :  { %561 = vmatpush1.bf16.msra.mxu1 %v1547_v12  ;;  %v1574_v35 = vld [vmem:[#allocation2 + $0xc0] ss:$8 sps:$4 sm:$0xff]   ;;  %v1577_v37 = vld [vmem:[#allocation2 + $0xb0] ss:$8 sps:$4 sm:$0xff]   ;;  %v1578_v39 = vld [vmem:[#allocation2 + $0xa4] ss:$8 sps:$4 sm:$0xff]  }
  0x32   :  { %562 = vmatprep.subr.bf16.mxu1 %v1548_v13  ;;  %v1538_v38 = vld [vmem:[%s2038_s0 + $0x38] sm:$0xff]   ;;  %v1580_v40 = vld [vmem:[#allocation2 + $0xa0] ss:$8 sps:$4 sm:$0xff]   ;;  %v1584_v43 = vld [vmem:[#allocation2 + $0x84] ss:$8 sps:$4 sm:$0xff]  }
  0x33   :  { %v1581_v41 = vld [vmem:[#allocation2 + $0x94] ss:$8 sps:$4 sm:$0xff]   ;;  %v1583_v42 = vld [vmem:[#allocation2 + $0x90] ss:$8 sps:$4 sm:$0xff]   ;;  %v1586_v44 = vld [vmem:[#allocation2 + $0x80] ss:$8 sps:$4 sm:$0xff]  }
  0x34   :  { %v1587_v45 = vld [vmem:[#allocation4 + $0x70] ss:$8 sps:$4 sm:$0xff]   ;;  %v1589_v46 = vld [vmem:[#allocation4 + $0x74] ss:$8 sps:$4 sm:$0xff]   ;;  %v1592_v47 = vld [vmem:[#allocation4 + $0x64] ss:$8 sps:$4 sm:$0xff]  }
  0x35   :  { %563 = vmatpush1.bf16.msra.mxu1 %v1550_v15  ;;  %921 = vmatprep.subr.bf16.mxu0 %v1589_v46  ;;  %v1590_v48 = vld [vmem:[#allocation4 + $0x60] ss:$8 sps:$4 sm:$0xff]   ;;  %v1595_v49 = vld [vmem:[#allocation4 + $0x54] ss:$8 sps:$4 sm:$0xff]   ;;  %v1593_v50 = vld [vmem:[#allocation4 + $0x50] ss:$8 sps:$4 sm:$0xff]  }
  0x36   :  { %1349 = vmatmul.mubr.msk.bf16.gmra.mxu0 %vm166_vm0, %v1532_v9  ;;  %564 = vmatprep.subr.bf16.mxu1 %v1551_v16  ;;  %v1598_v51 = vld [vmem:[#allocation4 + $0x44] ss:$8 sps:$4 sm:$0xff]   ;;  %v1596_v52 = vld [vmem:[#allocation4 + $0x40] ss:$8 sps:$4 sm:$0xff]   ;;  %v1601_v53 = vld [vmem:[#allocation4 + $0x34] ss:$8 sps:$4 sm:$0xff]  }
  0x37   :  { %243 = vmatprep.mubr.bf16.mxu0 %v1722_v0  ;;  %922 = vmatpush1.bf16.msra.mxu0 %v1587_v45  ;;  %v1599_v54 = vld [vmem:[#allocation4 + $0x30] ss:$8 sps:$4 sm:$0xff]   ;;  %v1604_v55 = vld [vmem:[#allocation4 + $0x24] ss:$8 sps:$4 sm:$0xff]   ;;  %v1602_v56 = vld [vmem:[#allocation4 + $0x20] ss:$8 sps:$4 sm:$0xff]  }
  0x38   :  { %923 = vmatprep.subr.bf16.mxu0 %v1592_v47  ;;  %v1607_v57 = vld [vmem:[#allocation4 + $0x14] ss:$8 sps:$4 sm:$0xff]   ;;  %v1605_v58 = vld [vmem:[#allocation4 + $0x10] ss:$8 sps:$4 sm:$0xff]   ;;  %v1610_v59 = vld [vmem:[#allocation4 + $0x4] ss:$8 sps:$4 sm:$0xff]  }
  0x39   :  { %565 = vmatpush1.bf16.msra.mxu1 %v1553_v17  ;;  %v1608_v60 = vld [vmem:[#allocation4] ss:$8 sps:$4 sm:$0xff]   ;;  %v1613_v61 = vld [vmem:[#allocation4 + $0xf4] ss:$8 sps:$4 sm:$0xff]   ;;  %v1611_v62 = vld [vmem:[#allocation4 + $0xf0] ss:$8 sps:$4 sm:$0xff]  }
  0x3a   :  { %566 = vmatprep.subr.bf16.mxu1 %v1554_v18  ;;  %v1616_v63 = vld [vmem:[#allocation4 + $0xe4] ss:$8 sps:$4 sm:$0xff]   ;;  %v1619_v1 = vld [vmem:[#allocation4 + $0xd4] ss:$8 sps:$4 sm:$0xff]   ;;  %v1617_v2 = vld [vmem:[#allocation4 + $0xd0] ss:$8 sps:$4 sm:$0xff]  }
  0x3b   :  { %924 = vmatpush1.bf16.msra.mxu0 %v1590_v48  ;;  %v1622_v3 = vld [vmem:[#allocation4 + $0xc4] ss:$8 sps:$4 sm:$0xff]   ;;  %v1620_v4 = vld [vmem:[#allocation4 + $0xc0] ss:$8 sps:$4 sm:$0xff]   ;;  %v1625_v5 = vld [vmem:[#allocation4 + $0xb4] ss:$8 sps:$4 sm:$0xff]  }
  0x3c   :  { %925 = vmatprep.subr.bf16.mxu0 %v1595_v49  ;;  %v1623_v6 = vld [vmem:[#allocation4 + $0xb0] ss:$8 sps:$4 sm:$0xff]   ;;  %v1834_v9 = vsub.s32 1, %v97_v8  ;;  %v94_v11 = vld [vmem:[%s2040_s2] sm:$0x3] }
  0x3d   :  { %567 = vmatpush1.bf16.msra.mxu1 %v1556_v20 }
  0x3e   :  { %1350 = vmatmul.mubr.msk.bf16.gmra.mxu0 %vm166_vm0, %v1533_v14  ;;  %568 = vmatprep.subr.bf16.mxu1 %v1557_v21  ;;  %v1842_v13 = vrot.slane %v94_v11, %v1834_v9  ;;  %v1845_v14 = vrot.slane %v94_v11, %v1836_v10 }
  0x3f   :  { %253 = vmatprep.mubr.bf16.mxu0 %v1722_v0  ;;  %926 = vmatpush1.bf16.msra.mxu0 %v1593_v50 }
  0x40   :  { %927 = vmatprep.subr.bf16.mxu0 %v1598_v51 }
  0x41   :  { %569 = vmatpush1.bf16.msra.mxu1 %v1559_v22 }
  0x42   :  { %570 = vmatprep.subr.bf16.mxu1 %v1560_v23 }
  0x43   :  { %928 = vmatpush1.bf16.msra.mxu0 %v1596_v52 }
  0x44   :  { %929 = vmatprep.subr.bf16.mxu0 %v1601_v53 }
  0x45   :  { %571 = vmatpush1.bf16.msra.mxu1 %v1562_v25 }
  0x46   :  { %1351 = vmatmul.mubr.msk.bf16.gmra.mxu0 %vm166_vm0, %v1534_v19  ;;  %572 = vmatprep.subr.bf16.mxu1 %v1563_v26 }
  0x47   :  { %263 = vmatprep.mubr.bf16.mxu0 %v1722_v0  ;;  %930 = vmatpush1.bf16.msra.mxu0 %v1599_v54 }
  0x48   :  { %931 = vmatprep.subr.bf16.mxu0 %v1604_v55 }
  0x49   :  { %573 = vmatpush2.bf16.msra.mxu1 %v1565_v27 }
  0x4a   :  { %574 = vmatprep.subr.bf16.mxu1 %v1566_v28 }
  0x4b   :  { %932 = vmatpush1.bf16.msra.mxu0 %v1602_v56 }
  0x4c   :  { %933 = vmatprep.subr.bf16.mxu0 %v1607_v57 }
  0x4d   :  { %575 = vmatpush2.bf16.msra.mxu1 %v1568_v30 }
  0x4e   :  { %1352 = vmatmul.mubr.msk.bf16.gmra.mxu0 %vm166_vm0, %v1535_v24  ;;  %576 = vmatprep.subr.bf16.mxu1 %v1569_v31 }
  0x4f   :  { %273 = vmatprep.mubr.bf16.mxu0 %v1722_v0  ;;  %934 = vmatpush1.bf16.msra.mxu0 %v1605_v58 }
  0x50   :  { %935 = vmatprep.subr.bf16.mxu0 %v1610_v59 }
  0x51   :  { %577 = vmatpush2.bf16.msra.mxu1 %v1571_v32 }
  0x52   :  { %578 = vmatprep.subr.bf16.mxu1 %v1572_v33 }
  0x53   :  { %936 = vmatpush1.bf16.msra.mxu0 %v1608_v60 }
  0x54   :  { %937 = vmatprep.subr.bf16.mxu0 %v1613_v61 }
  0x55   :  { %579 = vmatpush2.bf16.msra.mxu1 %v1574_v35 }
  0x56   :  { %1353 = vmatmul.mubr.msk.bf16.gmra.mxu0 %vm166_vm0, %v1536_v29  ;;  %580 = vmatprep.subr.bf16.mxu1 %v1575_v36 }
  0x57   :  { %283 = vmatprep.mubr.bf16.mxu0 %v1722_v0  ;;  %938 = vmatpush2.bf16.msra.mxu0 %v1611_v62 }
  0x58   :  { %939 = vmatprep.subr.bf16.mxu0 %v1616_v63 }
  0x59   :  { %581 = vmatpush2.bf16.msra.mxu1 %v1577_v37 }
  0x5a   :  { %582 = vmatprep.subr.bf16.mxu1 %v1578_v39 }
  0x5d   :  { %583 = vmatpush2.bf16.msra.mxu1 %v1580_v40 }
  0x5e   :  { %1354 = vmatmul.mubr.msk.bf16.gmra.mxu0 %vm166_vm0, %v1537_v34  ;;  %584 = vmatprep.subr.bf16.mxu1 %v1581_v41 }
  0x5f   :  { %293 = vmatprep.mubr.bf16.mxu0 %v1722_v0  ;;  %v1614_v0 = vld [vmem:[#allocation4 + $0xe0] ss:$8 sps:$4 sm:$0xff]  }
  0x60   :  { %940 = vmatpush2.bf16.msra.mxu0 %v1614_v0 }
  0x61   :  { %585 = vmatpush2.bf16.msra.mxu1 %v1583_v42  ;;  %941 = vmatprep.subr.bf16.mxu0 %v1619_v1 }
  0x62   :  { %586 = vmatprep.subr.bf16.mxu1 %v1584_v43 }
  0x64   :  { %942 = vmatpush2.bf16.msra.mxu0 %v1617_v2 }
  0x65   :  { %587 = vmatpush2.bf16.msra.mxu1 %v1586_v44  ;;  %943 = vmatprep.subr.bf16.mxu0 %v1622_v3 }
  0x66   :  { %1355 = vmatmul.mubr.msk.bf16.gmra.mxu0 %vm166_vm0, %v1538_v38 }
  0x68   :  { %944 = vmatpush2.bf16.msra.mxu0 %v1620_v4 }
  0x69   :  { %945 = vmatprep.subr.bf16.mxu0 %v1625_v5 }
  0x6c   :  { %946 = vmatpush2.bf16.msra.mxu0 %v1623_v6 }
  0xee   :  { %v225_v12 = vpop.f32.mrf.mxu0 }
  0xef   :  { %v226_v19 = vadd.f32 %v225_v12, %v1845_v14 }
  0xf0   :  { %v227_v15 = vpop.f32.mrf.mxu0 }
  0xf1   :  { %v228_v17 = vadd.f32 %v227_v15, %v1842_v13  ;;  %v304_v26 = vmax.f32 %v226_v19, 0.0 }
  0xf2   :  { %v229_v16 = vpop.f32.mrf.mxu0 }
  0xf3   :  { %v230_v18 = vadd.f32 %v229_v16, %v1845_v14  ;;  %v305_v24 = vmax.f32 %v228_v17, 0.0 }
  0xf4   :  { %v231_v20 = vpop.f32.mrf.mxu0 }
  0xf5   :  { %v232_v21 = vadd.f32 %v231_v20, %v1842_v13  ;;  %v306_v22 = vmax.f32 %v230_v18, 0.0 }
  0xf6   :  { %v235_v23 = vpop.f32.mrf.mxu0 }
  0xf7   :  { %v307_v25 = vmax.f32 %v232_v21, 0.0  ;;  %v336_v29 = vpack.c.bf16 %v306_v22, %v304_v26  ;;  %v236_v33 = vadd.f32 %v235_v23, %v1845_v14 }
  0xf8   :  { %v237_v27 = vpop.f32.mrf.mxu0 }
  0xf9   :  { %v337_v28 = vpack.c.bf16 %v307_v25, %v305_v24  ;;  %v238_v31 = vadd.f32 %v237_v27, %v1842_v13  ;;  %v308_v40 = vmax.f32 %v236_v33, 0.0 }
  0xfa   :  { %v239_v30 = vpop.f32.mrf.mxu0 }
  0xfb   :  { %v240_v32 = vadd.f32 %v239_v30, %v1845_v14  ;;  %588 = vmatprep.mubr.bf16.mxu1 %v337_v28  ;;  %v309_v38 = vmax.f32 %v238_v31, 0.0 }
  0xfc   :  { %v241_v34 = vpop.f32.mrf.mxu0  ;;  %589 = vmatmul.mubr.bf16.vlgmr.msra.gmra.mxu1 %v336_v29 }
  0xfd   :  { %v242_v35 = vadd.f32 %v241_v34, %v1842_v13  ;;  %v310_v36 = vmax.f32 %v240_v32, 0.0 }
  0xfe   :  { %v245_v37 = vpop.f32.mrf.mxu0 }
  0xff   :  { %v311_v39 = vmax.f32 %v242_v35, 0.0  ;;  %v338_v43 = vpack.c.bf16 %v310_v36, %v308_v40  ;;  %v246_v47 = vadd.f32 %v245_v37, %v1845_v14 }
 0x100   :  { %v247_v41 = vpop.f32.mrf.mxu0 }
 0x101   :  { %v339_v42 = vpack.c.bf16 %v311_v39, %v309_v38  ;;  %v248_v45 = vadd.f32 %v247_v41, %v1842_v13  ;;  %v312_v54 = vmax.f32 %v246_v47, 0.0 }
 0x102   :  { %v249_v44 = vpop.f32.mrf.mxu0 }
 0x103   :  { %v250_v46 = vadd.f32 %v249_v44, %v1845_v14  ;;  %598 = vmatprep.mubr.bf16.mxu1 %v339_v42  ;;  %v313_v52 = vmax.f32 %v248_v45, 0.0 }
 0x104   :  { %v251_v48 = vpop.f32.mrf.mxu0  ;;  %599 = vmatmul.mubr.bf16.gmra.mxu1 %v338_v43 }
 0x105   :  { %v252_v49 = vadd.f32 %v251_v48, %v1842_v13  ;;  %v314_v50 = vmax.f32 %v250_v46, 0.0 }
 0x106   :  { %v255_v51 = vpop.f32.mrf.mxu0 }
 0x107   :  { %v315_v53 = vmax.f32 %v252_v49, 0.0  ;;  %v340_v57 = vpack.c.bf16 %v314_v50, %v312_v54  ;;  %v256_v61 = vadd.f32 %v255_v51, %v1845_v14 }
 0x108   :  { %v257_v55 = vpop.f32.mrf.mxu0 }
 0x109   :  { %v341_v56 = vpack.c.bf16 %v315_v53, %v313_v52  ;;  %v258_v59 = vadd.f32 %v257_v55, %v1842_v13  ;;  %v316_v4 = vmax.f32 %v256_v61, 0.0 }
 0x10a   :  { %v259_v58 = vpop.f32.mrf.mxu0 }
 0x10b   :  { %v260_v60 = vadd.f32 %v259_v58, %v1845_v14  ;;  %608 = vmatprep.mubr.bf16.mxu1 %v341_v56  ;;  %v317_v2 = vmax.f32 %v258_v59, 0.0 }
 0x10c   :  { %v261_v62 = vpop.f32.mrf.mxu0  ;;  %609 = vmatmul.mubr.bf16.gmra.mxu1 %v340_v57 }
 0x10d   :  { %v262_v63 = vadd.f32 %v261_v62, %v1842_v13  ;;  %v318_v0 = vmax.f32 %v260_v60, 0.0 }
 0x10e   :  { %v265_v1 = vpop.f32.mrf.mxu0 }
 0x10f   :  { %v319_v3 = vmax.f32 %v262_v63, 0.0  ;;  %v342_v7 = vpack.c.bf16 %v318_v0, %v316_v4  ;;  %v266_v15 = vadd.f32 %v265_v1, %v1845_v14  ;;  %v1631_v4 = vld [vmem:[#allocation4 + $0x94] ss:$8 sps:$4 sm:$0xff]  }
 0x110   :  { %v267_v5 = vpop.f32.mrf.mxu0 }
 0x111   :  { %v343_v6 = vpack.c.bf16 %v319_v3, %v317_v2  ;;  %v268_v11 = vadd.f32 %v267_v5, %v1842_v13  ;;  %v320_v22 = vmax.f32 %v266_v15, 0.0  ;;  %v1628_v2 = vld [vmem:[#allocation4 + $0xa4] ss:$8 sps:$4 sm:$0xff]   ;;  %v1626_v3 = vld [vmem:[#allocation4 + $0xa0] ss:$8 sps:$4 sm:$0xff]  }
 0x112   :  { %v269_v8 = vpop.f32.mrf.mxu0  ;;  %947 = vmatprep.subr.bf16.mxu0 %v1628_v2  ;;  %v1629_v5 = vld [vmem:[#allocation4 + $0x90] ss:$8 sps:$4 sm:$0xff]   ;;  %v1640_v15 = vld [vmem:[#allocation6 + $0x28] sm:$0xff]  }
 0x113   :  { %v270_v12 = vadd.f32 %v269_v8, %v1845_v14  ;;  %618 = vmatprep.mubr.bf16.mxu1 %v343_v6  ;;  %v321_v20 = vmax.f32 %v268_v11, 0.0  ;;  %948 = vmatpush2.bf16.msra.mxu0 %v1626_v3  ;;  %v1632_v6 = vld [vmem:[#allocation4 + $0x80] ss:$8 sps:$4 sm:$0xff]   ;;  %v1637_v8 = vld [vmem:[#allocation6 + $0x70] sm:$0xff]  }
 0x114   :  { %v271_v16 = vpop.f32.mrf.mxu0  ;;  %619 = vmatmul.mubr.bf16.gmra.mxu1 %v342_v7  ;;  %949 = vmatprep.subr.bf16.mxu0 %v1631_v4  ;;  %v1636_v7 = vld [vmem:[#allocation6 + $0x38] sm:$0xff]   ;;  %v1638_v11 = vld [vmem:[#allocation6 + $0x30] sm:$0xff]  }
 0x115   :  { %v272_v17 = vadd.f32 %v271_v16, %v1842_v13  ;;  %v322_v18 = vmax.f32 %v270_v12, 0.0  ;;  %v1639_v12 = vld [vmem:[#allocation6 + $0x68] sm:$0xff]   ;;  %v1641_v16 = vld [vmem:[#allocation6 + $0x60] sm:$0xff]  }
 0x116   :  { %v275_v19 = vpop.f32.mrf.mxu0 }
 0x117   :  { %v323_v21 = vmax.f32 %v272_v17, 0.0  ;;  %v344_v25 = vpack.c.bf16 %v322_v18, %v320_v22  ;;  %v276_v29 = vadd.f32 %v275_v19, %v1845_v14  ;;  %950 = vmatpush2.bf16.msra.mxu0 %v1629_v5  ;;  %v1642_v17 = vld [vmem:[#allocation6 + $0x20] sm:$0xff]   ;;  %v1879_v18 = vld [vmem:[#allocation6 + $0x58] sm:$0xff]  }
 0x118   :  { %v277_v23 = vpop.f32.mrf.mxu0  ;;  %v1882_v19 = vld [vmem:[#allocation6 + $0x18] sm:$0xff]  }
 0x119   :  { %v345_v24 = vpack.c.bf16 %v323_v21, %v321_v20  ;;  %v278_v27 = vadd.f32 %v277_v23, %v1842_v13  ;;  %v324_v36 = vmax.f32 %v276_v29, 0.0  ;;  %v384_v20 = vld [vmem:[%s2042_s4] sm:$0x3] }
 0x11a   :  { %v279_v26 = vpop.f32.mrf.mxu0  ;;  %v1889_v22 = vrot.slane %v384_v20, %v1834_v9  ;;  %v1892_v23 = vrot.slane %v384_v20, %v1836_v10 }
 0x11b   :  { %v280_v28 = vadd.f32 %v279_v26, %v1845_v14  ;;  %628 = vmatprep.mubr.bf16.mxu1 %v345_v24  ;;  %v325_v34 = vmax.f32 %v278_v27, 0.0 }
 0x11c   :  { %v281_v30 = vpop.f32.mrf.mxu0  ;;  %629 = vmatmul.mubr.bf16.gmra.mxu1 %v344_v25 }
 0x11d   :  { %v282_v31 = vadd.f32 %v281_v30, %v1842_v13  ;;  %v326_v32 = vmax.f32 %v280_v28, 0.0 }
 0x11e   :  { %v285_v33 = vpop.f32.mrf.mxu0 }
 0x11f   :  { %v327_v35 = vmax.f32 %v282_v31, 0.0  ;;  %v346_v39 = vpack.c.bf16 %v326_v32, %v324_v36  ;;  %v286_v43 = vadd.f32 %v285_v33, %v1845_v14 }
 0x120   :  { %v287_v37 = vpop.f32.mrf.mxu0 }
 0x121   :  { %v347_v38 = vpack.c.bf16 %v327_v35, %v325_v34  ;;  %v288_v41 = vadd.f32 %v287_v37, %v1842_v13  ;;  %v328_v50 = vmax.f32 %v286_v43, 0.0 }
 0x122   :  { %v289_v40 = vpop.f32.mrf.mxu0 }
 0x123   :  { %v290_v42 = vadd.f32 %v289_v40, %v1845_v14  ;;  %638 = vmatprep.mubr.bf16.mxu1 %v347_v38  ;;  %v329_v48 = vmax.f32 %v288_v41, 0.0 }
 0x124   :  { %v291_v44 = vpop.f32.mrf.mxu0  ;;  %639 = vmatmul.mubr.bf16.gmra.mxu1 %v346_v39 }
 0x125   :  { %v292_v45 = vadd.f32 %v291_v44, %v1842_v13  ;;  %v330_v46 = vmax.f32 %v290_v42, 0.0 }
 0x126   :  { %v295_v47 = vpop.f32.mrf.mxu0 }
 0x127   :  { %v331_v49 = vmax.f32 %v292_v45, 0.0  ;;  %v348_v53 = vpack.c.bf16 %v330_v46, %v328_v50  ;;  %v296_v57 = vadd.f32 %v295_v47, %v1845_v14 }
 0x128   :  { %v297_v51 = vpop.f32.mrf.mxu0 }
 0x129   :  { %v349_v52 = vpack.c.bf16 %v331_v49, %v329_v48  ;;  %v298_v55 = vadd.f32 %v297_v51, %v1842_v13  ;;  %v332_v63 = vmax.f32 %v296_v57, 0.0 }
 0x12a   :  { %v299_v54 = vpop.f32.mrf.mxu0 }
 0x12b   :  { %v300_v56 = vadd.f32 %v299_v54, %v1845_v14  ;;  %648 = vmatprep.mubr.bf16.mxu1 %v349_v52  ;;  %v333_v61 = vmax.f32 %v298_v55, 0.0  ;;  %v1634_v14 = vld [vmem:[#allocation4 + $0x84] ss:$8 sps:$4 sm:$0xff]  }
 0x12c   :  { %v301_v58 = vpop.f32.mrf.mxu0  ;;  %649 = vmatmul.mubr.bf16.gmra.mxu1 %v348_v53  ;;  %951 = vmatprep.subr.bf16.mxu0 %v1634_v14 }
 0x12d   :  { %v302_v59 = vadd.f32 %v301_v58, %v1842_v13  ;;  %v334_v60 = vmax.f32 %v300_v56, 0.0  ;;  %952 = vmatpush2.bf16.msra.mxu0 %v1632_v6  ;;  %v1635_v13 = vld [vmem:[#allocation6 + $0x78] sm:$0xff]  }
 0x12e   :  { %1501 = vmatprep.subr.bf16.mxu1 %v1635_v13  ;;  %1437 = vmatprep.subr.bf16.mxu0 %v1635_v13 }
 0x12f   :  { %v335_v62 = vmax.f32 %v302_v59, 0.0  ;;  %v350_v1 = vpack.c.bf16 %v334_v60, %v332_v63  ;;  %1509 = vmatpush3.bf16.msra.mxu1 %v1636_v7 }
 0x130   :  { %1502 = vmatprep.subr.bf16.mxu1 %v1637_v8 }
 0x131   :  { %v351_v0 = vpack.c.bf16 %v335_v62, %v333_v61 }
 0x133   :  { %658 = vmatprep.mubr.bf16.mxu1 %v351_v0  ;;  %1510 = vmatpush3.bf16.msra.mxu1 %v1638_v11 }
 0x134   :  { %659 = vmatmul.mubr.bf16.gmra.mxu1 %v350_v1  ;;  %1503 = vmatprep.subr.bf16.mxu1 %v1639_v12 }
 0x137   :  { %1511 = vmatpush3.bf16.msra.mxu1 %v1640_v15 }
 0x138   :  { %1504 = vmatprep.subr.bf16.mxu1 %v1641_v16 }
 0x13b   :  { %1512 = vmatpush3.bf16.msra.mxu1 %v1642_v17 }
 0x13c   :  { %1505 = vmatprep.subr.bf16.mxu1 %v1879_v18 }
 0x13f   :  { %1513 = vmatpush3.bf16.msra.mxu1 %v1882_v19 }
 0x1bc   :  { %v590_v21 = vpop.f32.mrf.mxu1 }
 0x1bd   :  { %v591_v28 = vadd.f32 %v590_v21, %v1892_v23 }
 0x1be   :  { %v592_v24 = vpop.f32.mrf.mxu1 }
 0x1bf   :  { %v593_v26 = vadd.f32 %v592_v24, %v1889_v22  ;;  %v669_v35 = vmax.f32 %v591_v28, 0.0 }
 0x1c0   :  { %v594_v25 = vpop.f32.mrf.mxu1 }
 0x1c1   :  { %v595_v27 = vadd.f32 %v594_v25, %v1892_v23  ;;  %v670_v33 = vmax.f32 %v593_v26, 0.0 }
 0x1c2   :  { %v596_v29 = vpop.f32.mrf.mxu1 }
 0x1c3   :  { %v597_v30 = vadd.f32 %v596_v29, %v1889_v22  ;;  %v671_v31 = vmax.f32 %v595_v27, 0.0 }
 0x1c4   :  { %v600_v32 = vpop.f32.mrf.mxu1 }
 0x1c5   :  { %v672_v34 = vmax.f32 %v597_v30, 0.0  ;;  %v701_v38 = vpack.c.bf16 %v671_v31, %v669_v35  ;;  %v601_v42 = vadd.f32 %v600_v32, %v1892_v23 }
 0x1c6   :  { %v602_v36 = vpop.f32.mrf.mxu1 }
 0x1c7   :  { %v702_v37 = vpack.c.bf16 %v672_v34, %v670_v33  ;;  %v603_v40 = vadd.f32 %v602_v36, %v1889_v22  ;;  %v673_v49 = vmax.f32 %v601_v42, 0.0 }
 0x1c8   :  { %v604_v39 = vpop.f32.mrf.mxu1 }
 0x1c9   :  { %v605_v41 = vadd.f32 %v604_v39, %v1892_v23  ;;  %953 = vmatprep.mubr.bf16.mxu0 %v702_v37  ;;  %v674_v47 = vmax.f32 %v603_v40, 0.0 }
 0x1ca   :  { %v606_v43 = vpop.f32.mrf.mxu1  ;;  %954 = vmatmul.mubr.bf16.vlgmr.msra.gmra.mxu0 %v701_v38 }
 0x1cb   :  { %v607_v44 = vadd.f32 %v606_v43, %v1889_v22  ;;  %1438 = vmatpush3.bf16.msra.mxu0 %v1636_v7  ;;  %v675_v45 = vmax.f32 %v605_v41, 0.0 }
 0x1cc   :  { %v610_v46 = vpop.f32.mrf.mxu1  ;;  %1439 = vmatprep.subr.bf16.mxu0 %v1637_v8 }
 0x1cd   :  { %v676_v48 = vmax.f32 %v607_v44, 0.0  ;;  %v703_v52 = vpack.c.bf16 %v675_v45, %v673_v49  ;;  %v611_v56 = vadd.f32 %v610_v46, %v1892_v23 }
 0x1ce   :  { %v612_v50 = vpop.f32.mrf.mxu1 }
 0x1cf   :  { %v704_v51 = vpack.c.bf16 %v676_v48, %v674_v47  ;;  %1440 = vmatpush3.bf16.msra.mxu0 %v1638_v11  ;;  %v613_v54 = vadd.f32 %v612_v50, %v1889_v22  ;;  %v677_v63 = vmax.f32 %v611_v56, 0.0 }
 0x1d0   :  { %v614_v53 = vpop.f32.mrf.mxu1  ;;  %1441 = vmatprep.subr.bf16.mxu0 %v1639_v12 }
 0x1d1   :  { %v615_v55 = vadd.f32 %v614_v53, %v1892_v23  ;;  %963 = vmatprep.mubr.bf16.mxu0 %v704_v51  ;;  %v678_v61 = vmax.f32 %v613_v54, 0.0 }
 0x1d2   :  { %v616_v57 = vpop.f32.mrf.mxu1  ;;  %964 = vmatmul.mubr.bf16.gmra.mxu0 %v703_v52 }
 0x1d3   :  { %v617_v58 = vadd.f32 %v616_v57, %v1889_v22  ;;  %1442 = vmatpush3.bf16.msra.mxu0 %v1640_v15  ;;  %v679_v59 = vmax.f32 %v615_v55, 0.0 }
 0x1d4   :  { %v620_v60 = vpop.f32.mrf.mxu1  ;;  %1443 = vmatprep.subr.bf16.mxu0 %v1641_v16 }
 0x1d5   :  { %v680_v62 = vmax.f32 %v617_v58, 0.0  ;;  %v705_v2 = vpack.c.bf16 %v679_v59, %v677_v63  ;;  %v621_v14 = vadd.f32 %v620_v60, %v1892_v23 }
 0x1d6   :  { %v622_v0 = vpop.f32.mrf.mxu1 }
 0x1d7   :  { %v706_v1 = vpack.c.bf16 %v680_v62, %v678_v61  ;;  %1444 = vmatpush3.bf16.msra.mxu0 %v1642_v17  ;;  %v623_v4 = vadd.f32 %v622_v0, %v1889_v22  ;;  %v681_v15 = vmax.f32 %v621_v14, 0.0 }
 0x1d8   :  { %v624_v3 = vpop.f32.mrf.mxu1  ;;  %1445 = vmatprep.subr.bf16.mxu0 %v1879_v18 }
 0x1d9   :  { %v625_v5 = vadd.f32 %v624_v3, %v1892_v23  ;;  %973 = vmatprep.mubr.bf16.mxu0 %v706_v1  ;;  %v682_v11 = vmax.f32 %v623_v4, 0.0 }
 0x1da   :  { %v626_v6 = vpop.f32.mrf.mxu1  ;;  %974 = vmatmul.mubr.bf16.gmra.mxu0 %v705_v2 }
 0x1db   :  { %v627_v13 = vadd.f32 %v626_v6, %v1889_v22  ;;  %1446 = vmatpush3.bf16.msra.mxu0 %v1882_v19  ;;  %v683_v7 = vmax.f32 %v625_v5, 0.0 }
 0x1dc   :  { %v630_v8 = vpop.f32.mrf.mxu1 }
 0x1dd   :  { %v684_v12 = vmax.f32 %v627_v13, 0.0  ;;  %v707_v18 = vpack.c.bf16 %v683_v7, %v681_v15  ;;  %v631_v25 = vadd.f32 %v630_v8, %v1892_v23  ;;  %v1647_v15 = vld [vmem:[#allocation6 + $0x48] sm:$0xff]  }
 0x1de   :  { %v632_v16 = vpop.f32.mrf.mxu1 }
 0x1df   :  { %v708_v17 = vpack.c.bf16 %v684_v12, %v682_v11  ;;  %v633_v21 = vadd.f32 %v632_v16, %v1889_v22  ;;  %v685_v31 = vmax.f32 %v631_v25, 0.0  ;;  %v1645_v11 = vld [vmem:[#allocation6 + $0x50] sm:$0xff]   ;;  %v1650_v16 = vld [vmem:[#allocation6] sm:$0xff]  }
 0x1e0   :  { %v634_v20 = vpop.f32.mrf.mxu1  ;;  %v1646_v12 = vld [vmem:[#allocation6 + $0x10] sm:$0xff]   ;;  %1447 = vmatprep.subr.bf16.mxu0 %v1645_v11  ;;  %1506 = vmatprep.subr.bf16.mxu1 %v1645_v11 }
 0x1e1   :  { %v635_v24 = vadd.f32 %v634_v20, %v1892_v23  ;;  %983 = vmatprep.mubr.bf16.mxu0 %v708_v17  ;;  %v686_v29 = vmax.f32 %v633_v21, 0.0  ;;  %1448 = vmatpush3.bf16.msra.mxu0 %v1646_v12  ;;  %v749_v17 = vld [vmem:[%s2044_s6] sm:$0x3] }
 0x1e2   :  { %v636_v26 = vpop.f32.mrf.mxu1  ;;  %984 = vmatmul.mubr.bf16.gmra.mxu0 %v707_v18  ;;  %1514 = vmatpush3.bf16.msra.mxu1 %v1646_v12  ;;  %v1932_v20 = vrot.slane %v749_v17, %v1834_v9  ;;  %v1935_v21 = vrot.slane %v749_v17, %v1836_v10 }
 0x1e3   :  { %v637_v19 = vadd.f32 %v636_v26, %v1889_v22  ;;  %v687_v27 = vmax.f32 %v635_v24, 0.0  ;;  %1449 = vmatprep.subr.bf16.mxu0 %v1647_v15  ;;  %1507 = vmatprep.subr.bf16.mxu1 %v1647_v15 }
 0x1e4   :  { %v640_v28 = vpop.f32.mrf.mxu1 }
 0x1e5   :  { %v688_v30 = vmax.f32 %v637_v19, 0.0  ;;  %v709_v34 = vpack.c.bf16 %v687_v27, %v685_v31  ;;  %v641_v38 = vadd.f32 %v640_v28, %v1892_v23 }
 0x1e6   :  { %v642_v32 = vpop.f32.mrf.mxu1 }
 0x1e7   :  { %v710_v33 = vpack.c.bf16 %v688_v30, %v686_v29  ;;  %v643_v36 = vadd.f32 %v642_v32, %v1889_v22  ;;  %v689_v45 = vmax.f32 %v641_v38, 0.0 }
 0x1e8   :  { %v644_v35 = vpop.f32.mrf.mxu1 }
 0x1e9   :  { %v645_v37 = vadd.f32 %v644_v35, %v1892_v23  ;;  %993 = vmatprep.mubr.bf16.mxu0 %v710_v33  ;;  %v690_v43 = vmax.f32 %v643_v36, 0.0 }
 0x1ea   :  { %v646_v39 = vpop.f32.mrf.mxu1  ;;  %994 = vmatmul.mubr.bf16.gmra.mxu0 %v709_v34 }
 0x1eb   :  { %v647_v40 = vadd.f32 %v646_v39, %v1889_v22  ;;  %v691_v41 = vmax.f32 %v645_v37, 0.0 }
 0x1ec   :  { %v650_v42 = vpop.f32.mrf.mxu1 }
 0x1ed   :  { %v692_v44 = vmax.f32 %v647_v40, 0.0  ;;  %v711_v48 = vpack.c.bf16 %v691_v41, %v689_v45  ;;  %v651_v52 = vadd.f32 %v650_v42, %v1892_v23 }
 0x1ee   :  { %v652_v46 = vpop.f32.mrf.mxu1 }
 0x1ef   :  { %v712_v47 = vpack.c.bf16 %v692_v44, %v690_v43  ;;  %v653_v50 = vadd.f32 %v652_v46, %v1889_v22  ;;  %v693_v59 = vmax.f32 %v651_v52, 0.0 }
 0x1f0   :  { %v654_v49 = vpop.f32.mrf.mxu1 }
 0x1f1   :  { %v655_v51 = vadd.f32 %v654_v49, %v1892_v23  ;;  %1003 = vmatprep.mubr.bf16.mxu0 %v712_v47  ;;  %v694_v57 = vmax.f32 %v653_v50, 0.0 }
 0x1f2   :  { %v656_v53 = vpop.f32.mrf.mxu1  ;;  %1004 = vmatmul.mubr.bf16.gmra.mxu0 %v711_v48 }
 0x1f3   :  { %v657_v54 = vadd.f32 %v656_v53, %v1889_v22  ;;  %v695_v55 = vmax.f32 %v655_v51, 0.0 }
 0x1f4   :  { %v660_v56 = vpop.f32.mrf.mxu1 }
 0x1f5   :  { %v696_v58 = vmax.f32 %v657_v54, 0.0  ;;  %v713_v62 = vpack.c.bf16 %v695_v55, %v693_v59  ;;  %v661_v2 = vadd.f32 %v660_v56, %v1892_v23 }
 0x1f6   :  { %v662_v60 = vpop.f32.mrf.mxu1 }
 0x1f7   :  { %v714_v61 = vpack.c.bf16 %v696_v58, %v694_v57  ;;  %v663_v0 = vadd.f32 %v662_v60, %v1889_v22  ;;  %v697_v13 = vmax.f32 %v661_v2, 0.0 }
 0x1f8   :  { %v664_v63 = vpop.f32.mrf.mxu1 }
 0x1f9   :  { %v665_v1 = vadd.f32 %v664_v63, %v1892_v23  ;;  %1013 = vmatprep.mubr.bf16.mxu0 %v714_v61  ;;  %v698_v14 = vmax.f32 %v663_v0, 0.0  ;;  %v1648_v23 = vld [vmem:[#allocation6 + $0x8] sm:$0xff]  }
 0x1fa   :  { %v666_v3 = vpop.f32.mrf.mxu1  ;;  %1014 = vmatmul.mubr.bf16.gmra.mxu0 %v713_v62  ;;  %1515 = vmatpush3.bf16.msra.mxu1 %v1648_v23 }
 0x1fb   :  { %v667_v4 = vadd.f32 %v666_v3, %v1889_v22  ;;  %v699_v5 = vmax.f32 %v665_v1, 0.0  ;;  %1450 = vmatpush3.bf16.msra.mxu0 %v1648_v23  ;;  %v1649_v22 = vld [vmem:[#allocation6 + $0x40] sm:$0xff]  }
 0x1fc   :  { %1451 = vmatprep.subr.bf16.mxu0 %v1649_v22  ;;  %1508 = vmatprep.subr.bf16.mxu1 %v1649_v22 }
 0x1fd   :  { %v700_v6 = vmax.f32 %v667_v4, 0.0  ;;  %v715_v8 = vpack.c.bf16 %v699_v5, %v697_v13 }
 0x1fe   :  { %1516 = vmatpush3.bf16.msra.mxu1 %v1650_v16 }
 0x1ff   :  { %v716_v7 = vpack.c.bf16 %v700_v6, %v698_v14  ;;  %1452 = vmatpush3.bf16.msra.mxu0 %v1650_v16 }
 0x201   :  { %1023 = vmatprep.mubr.bf16.mxu0 %v716_v7 }
 0x202   :  { %1024 = vmatmul.mubr.bf16.gmra.mxu0 %v715_v8 }
 0x28a   :  { %v955_v18 = vpop.f32.mrf.mxu0 }
 0x28b   :  { %v956_v27 = vadd.f32 %v955_v18, %v1935_v21 }
 0x28c   :  { %v957_v24 = vpop.f32.mrf.mxu0 }
 0x28d   :  { %v958_v26 = vadd.f32 %v957_v24, %v1932_v20  ;;  %v1034_v9 = vmax.f32 %v956_v27, 0.0 }
 0x28e   :  { %v959_v25 = vpop.f32.mrf.mxu0 }
 0x28f   :  { %v960_v19 = vadd.f32 %v959_v25, %v1935_v21  ;;  %v1035_v32 = vmax.f32 %v958_v26, 0.0 }
 0x290   :  { %v961_v28 = vpop.f32.mrf.mxu0 }
 0x291   :  { %v962_v29 = vadd.f32 %v961_v28, %v1932_v20  ;;  %v1036_v30 = vmax.f32 %v960_v19, 0.0 }
 0x292   :  { %v965_v31 = vpop.f32.mrf.mxu0 }
 0x293   :  { %v1037_v33 = vmax.f32 %v962_v29, 0.0  ;;  %v1066_v10 = vpack.c.bf16 %v1036_v30, %v1034_v9  ;;  %v966_v39 = vadd.f32 %v965_v31, %v1935_v21 }
 0x294   :  { %v967_v34 = vpop.f32.mrf.mxu0 }
 0x295   :  { %v1067_v35 = vpack.c.bf16 %v1037_v33, %v1035_v32  ;;  %v968_v37 = vadd.f32 %v967_v34, %v1932_v20  ;;  %v1038_v46 = vmax.f32 %v966_v39, 0.0 }
 0x296   :  { %v969_v36 = vpop.f32.mrf.mxu0 }
 0x297   :  { %v970_v38 = vadd.f32 %v969_v36, %v1935_v21  ;;  %1249 = vmatprep.mubr.bf16.mxu0 %v1067_v35  ;;  %v1039_v44 = vmax.f32 %v968_v37, 0.0 }
 0x298   :  { %v971_v40 = vpop.f32.mrf.mxu0  ;;  %1250 = vmatmul.mubr.bf16.vlgmr.msra.gmra.mxu0 %v1066_v10 }
 0x299   :  { %v972_v41 = vadd.f32 %v971_v40, %v1932_v20  ;;  %v1040_v42 = vmax.f32 %v970_v38, 0.0 }
 0x29a   :  { %v975_v43 = vpop.f32.mrf.mxu0 }
 0x29b   :  { %v1041_v45 = vmax.f32 %v972_v41, 0.0  ;;  %v1068_v49 = vpack.c.bf16 %v1040_v42, %v1038_v46  ;;  %v976_v53 = vadd.f32 %v975_v43, %v1935_v21 }
 0x29c   :  { %v977_v47 = vpop.f32.mrf.mxu0 }
 0x29d   :  { %v1069_v48 = vpack.c.bf16 %v1041_v45, %v1039_v44  ;;  %v978_v51 = vadd.f32 %v977_v47, %v1932_v20  ;;  %v1042_v60 = vmax.f32 %v976_v53, 0.0 }
 0x29e   :  { %v979_v50 = vpop.f32.mrf.mxu0 }
 0x29f   :  { %v980_v52 = vadd.f32 %v979_v50, %v1935_v21  ;;  %1257 = vmatprep.mubr.bf16.mxu0 %v1069_v48  ;;  %v1043_v58 = vmax.f32 %v978_v51, 0.0 }
 0x2a0   :  { %v981_v54 = vpop.f32.mrf.mxu0  ;;  %1258 = vmatmul.mubr.bf16.gmra.mxu0 %v1068_v49 }
 0x2a1   :  { %v982_v55 = vadd.f32 %v981_v54, %v1932_v20  ;;  %v1044_v56 = vmax.f32 %v980_v52, 0.0 }
 0x2a2   :  { %v985_v57 = vpop.f32.mrf.mxu0 }
 0x2a3   :  { %v1045_v59 = vmax.f32 %v982_v55, 0.0  ;;  %v1070_v63 = vpack.c.bf16 %v1044_v56, %v1042_v60  ;;  %v986_v3 = vadd.f32 %v985_v57, %v1935_v21 }
 0x2a4   :  { %v987_v61 = vpop.f32.mrf.mxu0 }
 0x2a5   :  { %v1071_v62 = vpack.c.bf16 %v1045_v59, %v1043_v58  ;;  %v988_v1 = vadd.f32 %v987_v61, %v1932_v20  ;;  %v1046_v8 = vmax.f32 %v986_v3, 0.0 }
 0x2a6   :  { %v989_v0 = vpop.f32.mrf.mxu0 }
 0x2a7   :  { %v990_v2 = vadd.f32 %v989_v0, %v1935_v21  ;;  %1265 = vmatprep.mubr.bf16.mxu0 %v1071_v62  ;;  %v1047_v13 = vmax.f32 %v988_v1, 0.0 }
 0x2a8   :  { %v991_v4 = vpop.f32.mrf.mxu0  ;;  %1266 = vmatmul.mubr.bf16.gmra.mxu0 %v1070_v63 }
 0x2a9   :  { %v992_v5 = vadd.f32 %v991_v4, %v1932_v20  ;;  %v1048_v14 = vmax.f32 %v990_v2, 0.0 }
 0x2aa   :  { %v995_v6 = vpop.f32.mrf.mxu0 }
 0x2ab   :  { %v1049_v7 = vmax.f32 %v992_v5, 0.0  ;;  %v1072_v15 = vpack.c.bf16 %v1048_v14, %v1046_v8  ;;  %v996_v17 = vadd.f32 %v995_v6, %v1935_v21  ;;  %v1972_v6 = vld [vmem:[%s2046_s8] ss:$0 sm:$0xff] }
 0x2ac   :  { %v997_v11 = vpop.f32.mrf.mxu0 }
 0x2ad   :  { %v1073_v12 = vpack.c.bf16 %v1049_v7, %v1047_v13  ;;  %v998_v22 = vadd.f32 %v997_v11, %v1932_v20  ;;  %v1050_v28 = vmax.f32 %v996_v17, 0.0 }
 0x2ae   :  { %v999_v23 = vpop.f32.mrf.mxu0 }
 0x2af   :  { %v1000_v16 = vadd.f32 %v999_v23, %v1935_v21  ;;  %1273 = vmatprep.mubr.bf16.mxu1 %v1073_v12  ;;  %v1051_v19 = vmax.f32 %v998_v22, 0.0 }
 0x2b0   :  { %v1001_v18 = vpop.f32.mrf.mxu0  ;;  %1274 = vmatmul.mubr.bf16.vlgmr.msra.gmra.mxu1 %v1072_v15 }
 0x2b1   :  { %v1002_v24 = vadd.f32 %v1001_v18, %v1932_v20  ;;  %v1052_v25 = vmax.f32 %v1000_v16, 0.0 }
 0x2b2   :  { %v1005_v26 = vpop.f32.mrf.mxu0 }
 0x2b3   :  { %v1053_v27 = vmax.f32 %v1002_v24, 0.0  ;;  %v1074_v31 = vpack.c.bf16 %v1052_v25, %v1050_v28  ;;  %v1006_v34 = vadd.f32 %v1005_v26, %v1935_v21 }
 0x2b4   :  { %v1007_v29 = vpop.f32.mrf.mxu0 }
 0x2b5   :  { %v1075_v30 = vpack.c.bf16 %v1053_v27, %v1051_v19  ;;  %v1008_v33 = vadd.f32 %v1007_v29, %v1932_v20  ;;  %v1054_v40 = vmax.f32 %v1006_v34, 0.0 }
 0x2b6   :  { %v1009_v32 = vpop.f32.mrf.mxu0 }
 0x2b7   :  { %v1010_v9 = vadd.f32 %v1009_v32, %v1935_v21  ;;  %1281 = vmatprep.mubr.bf16.mxu1 %v1075_v30  ;;  %v1055_v38 = vmax.f32 %v1008_v33, 0.0 }
 0x2b8   :  { %v1011_v35 = vpop.f32.mrf.mxu0  ;;  %1282 = vmatmul.mubr.bf16.gmra.mxu1 %v1074_v31 }
 0x2b9   :  { %v1012_v10 = vadd.f32 %v1011_v35, %v1932_v20  ;;  %v1056_v36 = vmax.f32 %v1010_v9, 0.0 }
 0x2ba   :  { %v1015_v37 = vpop.f32.mrf.mxu0 }
 0x2bb   :  { %v1057_v39 = vmax.f32 %v1012_v10, 0.0  ;;  %v1076_v43 = vpack.c.bf16 %v1056_v36, %v1054_v40  ;;  %v1016_v47 = vadd.f32 %v1015_v37, %v1935_v21 }
 0x2bc   :  { %v1017_v41 = vpop.f32.mrf.mxu0 }
 0x2bd   :  { %v1077_v42 = vpack.c.bf16 %v1057_v39, %v1055_v38  ;;  %v1018_v45 = vadd.f32 %v1017_v41, %v1932_v20  ;;  %v1058_v54 = vmax.f32 %v1016_v47, 0.0 }
 0x2be   :  { %v1019_v44 = vpop.f32.mrf.mxu0 }
 0x2bf   :  { %v1020_v46 = vadd.f32 %v1019_v44, %v1935_v21  ;;  %1289 = vmatprep.mubr.bf16.mxu1 %v1077_v42  ;;  %v1059_v52 = vmax.f32 %v1018_v45, 0.0 }
 0x2c0   :  { %v1021_v48 = vpop.f32.mrf.mxu0  ;;  %1290 = vmatmul.mubr.bf16.gmra.mxu1 %v1076_v43 }
 0x2c1   :  { %v1022_v49 = vadd.f32 %v1021_v48, %v1932_v20  ;;  %v1060_v50 = vmax.f32 %v1020_v46, 0.0 }
 0x2c2   :  { %v1025_v51 = vpop.f32.mrf.mxu0 }
 0x2c3   :  { %v1061_v53 = vmax.f32 %v1022_v49, 0.0  ;;  %v1078_v57 = vpack.c.bf16 %v1060_v50, %v1058_v54  ;;  %v1026_v61 = vadd.f32 %v1025_v51, %v1935_v21 }
 0x2c4   :  { %v1027_v55 = vpop.f32.mrf.mxu0 }
 0x2c5   :  { %v1079_v56 = vpack.c.bf16 %v1061_v53, %v1059_v52  ;;  %v1028_v59 = vadd.f32 %v1027_v55, %v1932_v20  ;;  %v1062_v3 = vmax.f32 %v1026_v61, 0.0 }
 0x2c6   :  { %v1029_v58 = vpop.f32.mrf.mxu0 }
 0x2c7   :  { %v1030_v60 = vadd.f32 %v1029_v58, %v1935_v21  ;;  %1297 = vmatprep.mubr.bf16.mxu1 %v1079_v56  ;;  %v1063_v1 = vmax.f32 %v1028_v59, 0.0 }
 0x2c8   :  { %v1031_v62 = vpop.f32.mrf.mxu0  ;;  %1298 = vmatmul.mubr.bf16.gmra.mxu1 %v1078_v57 }
 0x2c9   :  { %v1032_v63 = vadd.f32 %v1031_v62, %v1932_v20  ;;  %v1064_v0 = vmax.f32 %v1030_v60, 0.0 }
 0x2cb   :  { %v1065_v2 = vmax.f32 %v1032_v63, 0.0  ;;  %v1080_v5 = vpack.c.bf16 %v1064_v0, %v1062_v3 }
 0x2cd   :  { %v1081_v4 = vpack.c.bf16 %v1065_v2, %v1063_v1 }
 0x2cf   :  { %1305 = vmatprep.mubr.bf16.mxu1 %v1081_v4 }
 0x2d0   :  { %1306 = vmatmul.mubr.bf16.gmra.mxu1 %v1080_v5 }
 0x358   :  { %v1453_v14 = vpop.f32.mrf.mxu0 }
 0x35a   :  { %v1454_v13 = vpop.f32.mrf.mxu0 }
 0x35b   :  { %v1455_v21 = vadd.f32 %v1454_v13, %v1453_v14 }
 0x35c   :  { %v1456_v7 = vpop.f32.mrf.mxu0 }
 0x35d   :  { %v1252_v8 = vadd.f32 %v1455_v21, %v1972_v6 }
 0x35e   :  { %v1457_v20 = vpop.f32.mrf.mxu0 }
 0x35f   :  { %1314 = vst [vmem:[%s2047_s9] sm:$0xff] %v1252_v8  ;;  %v1458_v11 = vadd.f32 %v1457_v20, %v1456_v7 }
 0x360   :  { %v1459_v12 = vpop.f32.mrf.mxu0 }
 0x361   :  { %v1255_v15 = vadd.f32 %v1458_v11, %v1972_v6 }
 0x362   :  { %v1460_v23 = vpop.f32.mrf.mxu0 }
 0x363   :  { %1315 = vst [vmem:[%s2047_s9 + $0x8] sm:$0xff] %v1255_v15  ;;  %v1461_v22 = vadd.f32 %v1460_v23, %v1459_v12 }
 0x364   :  { %v1462_v16 = vpop.f32.mrf.mxu0 }
 0x365   :  { %v1260_v17 = vadd.f32 %v1461_v22, %v1972_v6 }
 0x366   :  { %v1463_v18 = vpop.f32.mrf.mxu0 }
 0x367   :  { %1316 = vst [vmem:[%s2047_s9 + $0x10] sm:$0xff] %v1260_v17  ;;  %v1464_v24 = vadd.f32 %v1463_v18, %v1462_v16 }
 0x368   :  { %v1465_v25 = vpop.f32.mrf.mxu0 }
 0x369   :  { %v1263_v26 = vadd.f32 %v1464_v24, %v1972_v6 }
 0x36a   :  { %v1466_v19 = vpop.f32.mrf.mxu0 }
 0x36b   :  { %1317 = vst [vmem:[%s2047_s9 + $0x18] sm:$0xff] %v1263_v26  ;;  %v1467_v27 = vadd.f32 %v1466_v19, %v1465_v25 }
 0x36c   :  { %v1468_v28 = vpop.f32.mrf.mxu0 }
 0x36d   :  { %v1268_v29 = vadd.f32 %v1467_v27, %v1972_v6 }
 0x36e   :  { %v1469_v30 = vpop.f32.mrf.mxu0 }
 0x36f   :  { %1318 = vst [vmem:[%s2047_s9 + $0x20] sm:$0xff] %v1268_v29  ;;  %v1470_v31 = vadd.f32 %v1469_v30, %v1468_v28 }
 0x370   :  { %v1471_v32 = vpop.f32.mrf.mxu1 }
 0x371   :  { %v1271_v33 = vadd.f32 %v1470_v31, %v1972_v6 }
 0x372   :  { %v1472_v9 = vpop.f32.mrf.mxu1 }
 0x373   :  { %1319 = vst [vmem:[%s2047_s9 + $0x28] sm:$0xff] %v1271_v33  ;;  %v1473_v34 = vadd.f32 %v1472_v9, %v1471_v32 }
 0x374   :  { %v1474_v35 = vpop.f32.mrf.mxu1 }
 0x375   :  { %v1276_v10 = vadd.f32 %v1473_v34, %v1972_v6 }
 0x376   :  { %v1475_v36 = vpop.f32.mrf.mxu1 }
 0x377   :  { %1320 = vst [vmem:[%s2047_s9 + $0x30] sm:$0xff] %v1276_v10  ;;  %v1476_v37 = vadd.f32 %v1475_v36, %v1474_v35 }
 0x378   :  { %v1477_v38 = vpop.f32.mrf.mxu1 }
 0x379   :  { %v1279_v39 = vadd.f32 %v1476_v37, %v1972_v6 }
 0x37a   :  { %v1478_v40 = vpop.f32.mrf.mxu1 }
 0x37b   :  { %1321 = vst [vmem:[%s2047_s9 + $0x38] sm:$0xff] %v1279_v39  ;;  %v1479_v41 = vadd.f32 %v1478_v40, %v1477_v38 }
 0x37c   :  { %v1480_v42 = vpop.f32.mrf.mxu1 }
 0x37d   :  { %v1284_v43 = vadd.f32 %v1479_v41, %v1972_v6 }
 0x37e   :  { %v1481_v44 = vpop.f32.mrf.mxu1 }
 0x37f   :  { %1322 = vst [vmem:[%s2047_s9 + $0x40] sm:$0xff] %v1284_v43  ;;  %v1482_v45 = vadd.f32 %v1481_v44, %v1480_v42 }
 0x380   :  { %v1483_v46 = vpop.f32.mrf.mxu1 }
 0x381   :  { %v1287_v47 = vadd.f32 %v1482_v45, %v1972_v6 }
 0x382   :  { %v1484_v48 = vpop.f32.mrf.mxu1 }
 0x383   :  { %1323 = vst [vmem:[%s2047_s9 + $0x48] sm:$0xff] %v1287_v47  ;;  %v1485_v49 = vadd.f32 %v1484_v48, %v1483_v46 }
 0x384   :  { %v1486_v50 = vpop.f32.mrf.mxu1 }
 0x385   :  { %v1292_v51 = vadd.f32 %v1485_v49, %v1972_v6 }
 0x386   :  { %v1487_v52 = vpop.f32.mrf.mxu1 }
 0x387   :  { %1324 = vst [vmem:[%s2047_s9 + $0x50] sm:$0xff] %v1292_v51  ;;  %v1488_v53 = vadd.f32 %v1487_v52, %v1486_v50 }
 0x388   :  { %v1489_v54 = vpop.f32.mrf.mxu1 }
 0x389   :  { %v1295_v55 = vadd.f32 %v1488_v53, %v1972_v6 }
 0x38a   :  { %v1490_v56 = vpop.f32.mrf.mxu1 }
 0x38b   :  { %1325 = vst [vmem:[%s2047_s9 + $0x58] sm:$0xff] %v1295_v55  ;;  %v1491_v57 = vadd.f32 %v1490_v56, %v1489_v54 }
 0x38c   :  { %v1492_v58 = vpop.f32.mrf.mxu1 }
 0x38d   :  { %v1300_v59 = vadd.f32 %v1491_v57, %v1972_v6 }
 0x38e   :  { %v1493_v60 = vpop.f32.mrf.mxu1 }
 0x38f   :  { %1326 = vst [vmem:[%s2047_s9 + $0x60] sm:$0xff] %v1300_v59  ;;  %v1494_v61 = vadd.f32 %v1493_v60, %v1492_v58 }
 0x390   :  { %v1495_v62 = vpop.f32.mrf.mxu1 }
 0x391   :  { %v1303_v63 = vadd.f32 %v1494_v61, %v1972_v6 }
 0x392   :  { %v1496_v0 = vpop.f32.mrf.mxu1 }
 0x393   :  { %1327 = vst [vmem:[%s2047_s9 + $0x68] sm:$0xff] %v1303_v63  ;;  %v1497_v1 = vadd.f32 %v1496_v0, %v1495_v62 }
 0x394   :  { %v1498_v2 = vpop.f32.mrf.mxu1 }
 0x395   :  { %v1308_v3 = vadd.f32 %v1497_v1, %v1972_v6 }
 0x396   :  { %v1499_v4 = vpop.f32.mrf.mxu1 }
 0x397   :  { %1328 = vst [vmem:[%s2047_s9 + $0x70] sm:$0xff] %v1308_v3  ;;  %v1500_v5 = vadd.f32 %v1499_v4, %v1498_v2 }
 0x399   :  { %v1311_v14 = vadd.f32 %v1500_v5, %v1972_v6 }
 0x39b   :  { %1329 = vst [vmem:[%s2047_s9 + $0x78] sm:$0xff] %v1311_v14 }
 0x39c   :  { %1334 = vsyncpa [#allocation3], 1 }
 0x39d   :  { %1335 = vsyncpa [#allocation5], 1 }

</bundles_post_ra>
